<compile_context>
chip_gen: v7x
topology: tpu7x:2x2x1
jax: 0.10.0
libtpu: 0.0.40
codegen_flags: <defaults>
</compile_context>

<pallas_src>
import jax
import jax.numpy as jnp
from jax.experimental import pallas as pl
from jax.experimental.pallas import tpu as pltpu

_SUB = 16  # batch-tile sublane quantum (keeps bf16 operands packed-tile aligned)


def bownn_kernel(idx_ref, emb_ref, wo_ref, out_ref):
    idx = idx_ref[...]                      # (tile_b, L) int32
    emb = emb_ref[...]                      # (v_pad, d_pad) param dtype (bf16/f32)
    wo = wo_ref[...]                        # (d_pad, c_pad) param dtype
    tile_b, num_tokens = idx.shape
    v_pad = emb.shape[0]

    # Exact-f32 path uses multi-pass MXU; bf16 path uses native single-pass.
    prec = jax.lax.Precision.HIGHEST if emb.dtype == jnp.float32 else None

    # Small (1, v_pad) iota, broadcast against each token column (no (tile_b, v_pad) iota).
    vocab_iota = jax.lax.broadcasted_iota(jnp.int32, (1, v_pad), 1)

    # Fused one-hot, token-major along sublanes: (L*tile_b, v_pad).  Built
    # directly in the MXU operand dtype (bf16 by default).  tile_b is a
    # multiple of 16, so every concat operand is packed-tile aligned.
    one_hot = jnp.concatenate(
        [(idx[:, j:j + 1] == vocab_iota).astype(emb.dtype)
         for j in range(num_tokens)],
        axis=0)

    # Single streaming MXU gather for all L tokens, f32 accumulation.
    gathered = jnp.dot(one_hot, emb,
                       preferred_element_type=jnp.float32,
                       precision=prec)      # (L*tile_b, d_pad) f32

    # EmbeddingBag(mode='max'): balanced tree-max over the L token slices.
    parts = [gathered[j * tile_b:(j + 1) * tile_b, :] for j in range(num_tokens)]
    while len(parts) > 1:
        nxt = [jnp.maximum(a, b) for a, b in zip(parts[0::2], parts[1::2])]
        if len(parts) % 2:
            nxt.append(parts[-1])
        parts = nxt
    bag = parts[0]                          # (tile_b, d_pad) f32

    # Linear (no bias): bf16 (or exact-f32) MXU operands, f32 accumulate,
    # lane-dense (padded) output store.
    y = jnp.dot(bag.astype(wo.dtype), wo,
                preferred_element_type=jnp.float32,
                precision=prec)
    out_ref[...] = y.astype(out_ref.dtype)


def _round_up(x, m):
    return ((x + m - 1) // m) * m


def bownn_forward(x, emb_table, w_out, *, param_dtype=jnp.bfloat16,
                  out_dtype=jnp.float32, tile_b=1024):
    """x: (B, 1, L) or (B, L) integer token ids.
       emb_table: (vocab_size, internal_dim).
       w_out: (internal_dim, n_components) (i.e. nn.Linear.weight.T, so the
              result equals bag @ weight.T)."""
    b = x.shape[0]
    idx = x.reshape(b, -1).astype(jnp.int32)            # x.squeeze(1).long()
    num_tokens = idx.shape[1]
    if num_tokens < 1:
        raise ValueError("BOWNN requires at least one token per bag (L >= 1).")
    vocab_size, internal_dim = emb_table.shape
    n_components = w_out.shape[1]

    # Lane-dense padding: minor dims up to multiples of 128.
    v_pad = _round_up(vocab_size, 128)
    d_pad = _round_up(internal_dim, 128)
    c_pad = _round_up(n_components, 128)

    p_item = jnp.dtype(param_dtype).itemsize
    o_item = jnp.dtype(out_dtype).itemsize
    # Parameters are whole-array VMEM-resident (single-buffered): count once.
    p_bytes = (v_pad * d_pad + d_pad * c_pad) * p_item

    # Per-generation VMEM capacity (fallback: 64 MiB = v7x, the smallest).
    try:
        vmem_capacity = int(pltpu.get_tpu_info().vmem_capacity_bytes)
    except Exception:
        vmem_capacity = 64 << 20
    vmem_cap = int(vmem_capacity * 0.85)    # headroom for Mosaic internals

    # Batch tiling: target >= ~4 grid steps (so v7x's two TensorCores both get
    # work under dimension_semantics=("parallel",)), big tiles otherwise
    # (amortize per-step overhead on v5e/v6e), 16-row quantized.
    b_q = _round_up(b, _SUB)
    tile_b = max(_SUB, min(_round_up(tile_b, _SUB),
                           _round_up(pl.cdiv(b_q, 4), _SUB),
                           b_q))

    def footprint(tb):
        # Double-buffered per-step blocks (idx includes lane padding to 128)
        idx_blk = tb * _round_up(num_tokens, 128) * 4
        out_blk = tb * c_pad * o_item
        # In-kernel intermediates: one_hot, gathered, bag, y
        one_hot = num_tokens * tb * v_pad * p_item
        gathered = num_tokens * tb * d_pad * 4
        bag_y = tb * d_pad * 4 + tb * c_pad * 4
        return (p_bytes + 2 * (idx_blk + out_blk)
                + one_hot + gathered + bag_y + (2 << 20))

    # Shrink the tile instead of silently under-provisioning VMEM.
    while tile_b > _SUB and footprint(tile_b) > vmem_cap:
        tile_b = max(_SUB, _round_up(tile_b // 2, _SUB))

    b_pad = _round_up(b_q, tile_b)
    n_tiles = b_pad // tile_b
    vmem_limit = int(min(max(footprint(tile_b), 32 << 20), vmem_cap))

    # Zero-pad params / indices (padded table rows & weight rows are 0; padded
    # batch rows use index 0 and are sliced off at the end).
    emb_p = jnp.zeros((v_pad, d_pad), param_dtype).at[
        :vocab_size, :internal_dim].set(emb_table.astype(param_dtype))
    wo_p = jnp.zeros((d_pad, c_pad), param_dtype).at[
        :internal_dim, :n_components].set(w_out.astype(param_dtype))
    idx_p = jnp.zeros((b_pad, num_tokens), jnp.int32).at[:b, :].set(idx)

    cost = pl.CostEstimate(
        flops=2 * b_pad * num_tokens * v_pad * d_pad + 2 * b_pad * d_pad * c_pad,
        transcendentals=0,
        bytes_accessed=b_pad * num_tokens * 4 + b_pad * c_pad * o_item + p_bytes)

    out = pl.pallas_call(
        bownn_kernel,
        out_shape=jax.ShapeDtypeStruct((b_pad, c_pad), out_dtype),
        grid_spec=pltpu.PrefetchScalarGridSpec(
            num_scalar_prefetch=0,
            grid=(n_tiles,),
            in_specs=[
                pl.BlockSpec((tile_b, num_tokens), lambda i: (i, 0)),
                # Whole-array, VMEM-resident, single-buffered parameters.
                pl.BlockSpec(memory_space=pltpu.MemorySpace.VMEM),
                pl.BlockSpec(memory_space=pltpu.MemorySpace.VMEM),
            ],
            out_specs=pl.BlockSpec((tile_b, c_pad), lambda i: (i, 0)),
        ),
        compiler_params=pltpu.CompilerParams(
            dimension_semantics=("parallel",),     # v7x: shard batch tiles on 2 TCs
            vmem_limit_bytes=vmem_limit),
        cost_estimate=cost,
    )(idx_p, emb_p, wo_p)

    return out[:b, :n_components]


if __name__ == "__main__":
    # Small shapes consistent with the module: batch=8, bag length L=12,
    # vocab_size=100, internal_dim=64, n_components=10.
    batch, seq_len = 8, 12
    vocab_size, internal_dim, n_components = 100, 64, 10

    key = jax.random.PRNGKey(0)
    kx, ke, kw = jax.random.split(key, 3)
    x = jax.random.randint(kx, (batch, 1, seq_len), 0, vocab_size, dtype=jnp.int32)
    emb_table = jax.random.normal(ke, (vocab_size, internal_dim), jnp.float32)
    bound = 1.0 / (internal_dim ** 0.5)
    w_out = jax.random.uniform(kw, (internal_dim, n_components), jnp.float32,
                               -bound, bound)

    def ref(x_in, emb, wo):
        idx = x_in.reshape(x_in.shape[0], -1)
        bag = jnp.max(emb[idx], axis=1)                    # EmbeddingBag mode='max'
        return jnp.dot(bag, wo, precision=jax.lax.Precision.HIGHEST)

    # Default path: bf16 MXU operands, f32 accumulate. Compare vs bf16-rounded ref.
    y = bownn_forward(x, emb_table, w_out)
    jax.block_until_ready(y)
    assert y.shape == (batch, n_components)
    emb_b = emb_table.astype(jnp.bfloat16).astype(jnp.float32)
    wo_b = w_out.astype(jnp.bfloat16).astype(jnp.float32)
    assert jnp.allclose(y, ref(x, emb_b, wo_b), atol=1e-2, rtol=1e-2)

    # Exact-f32 path (Precision.HIGHEST inside the kernel) vs exact reference.
    y32 = bownn_forward(x, emb_table, w_out, param_dtype=jnp.float32)
    jax.block_until_ready(y32)
    assert jnp.allclose(y32, ref(x, emb_table, w_out), atol=1e-4, rtol=1e-4)

    print("KERNEL_OK")
</pallas_src>

<mosaic_0001>
module attributes {stable_mosaic.version = 11 : i64} {
  func.func @bownn_kernel(%arg0: i32, %arg1: memref<16x12xi32, #tpu.memory_space<vmem>>, %arg2: memref<128x128xbf16, #tpu.memory_space<vmem>>, %arg3: memref<128x128xbf16, #tpu.memory_space<vmem>>, %arg4: memref<16x128xf32, #tpu.memory_space<vmem>>) attributes {dimension_semantics = [#tpu.dimension_semantics<parallel>], iteration_bounds = array<i64: 1>, scalar_prefetch = 0 : i64, scratch_operands = 0 : i64, tpu.core_type = #tpu.core_type<tc>, window_params = [{transform_indices = @transform_0, window_bounds = array<i64: 16, 12>}, {pipeline_mode = #tpu.pipeline_mode<synchronous>, transform_indices = @transform_1, window_bounds = array<i64: 128, 128>}, {pipeline_mode = #tpu.pipeline_mode<synchronous>, transform_indices = @transform_2, window_bounds = array<i64: 128, 128>}, {transform_indices = @transform_3, window_bounds = array<i64: 16, 128>}]} {
    %c0 = arith.constant 0 : index
    %c0_0 = arith.constant 0 : index
    %0 = vector.load %arg1[%c0, %c0_0] : memref<16x12xi32, #tpu.memory_space<vmem>>, vector<16x12xi32>
    %c0_1 = arith.constant 0 : index
    %c0_2 = arith.constant 0 : index
    %1 = vector.load %arg2[%c0_1, %c0_2] : memref<128x128xbf16, #tpu.memory_space<vmem>>, vector<128x128xbf16>
    %c0_3 = arith.constant 0 : index
    %c0_4 = arith.constant 0 : index
    %2 = vector.load %arg3[%c0_3, %c0_4] : memref<128x128xbf16, #tpu.memory_space<vmem>>, vector<128x128xbf16>
    %3 = tpu.iota {dimensions = array<i32: 1>} : vector<1x128xi32>
    %4 = vector.extract_strided_slice %0 {offsets = [0, 0], sizes = [16, 1], strides = [1, 1]} : vector<16x12xi32> to vector<16x1xi32>
    %5 = vector.broadcast %4 : vector<16x1xi32> to vector<16x128xi32>
    %6 = vector.broadcast %3 : vector<1x128xi32> to vector<16x128xi32>
    %7 = arith.cmpi eq, %5, %6 : vector<16x128xi32>
    %8 = arith.extui %7 : vector<16x128xi1> to vector<16x128xi32>
    %9 = arith.sitofp %8 : vector<16x128xi32> to vector<16x128xf32>
    %10 = arith.truncf %9 : vector<16x128xf32> to vector<16x128xbf16>
    %11 = vector.extract_strided_slice %0 {offsets = [0, 1], sizes = [16, 1], strides = [1, 1]} : vector<16x12xi32> to vector<16x1xi32>
    %12 = vector.broadcast %11 : vector<16x1xi32> to vector<16x128xi32>
    %13 = vector.broadcast %3 : vector<1x128xi32> to vector<16x128xi32>
    %14 = arith.cmpi eq, %12, %13 : vector<16x128xi32>
    %15 = arith.extui %14 : vector<16x128xi1> to vector<16x128xi32>
    %16 = arith.sitofp %15 : vector<16x128xi32> to vector<16x128xf32>
    %17 = arith.truncf %16 : vector<16x128xf32> to vector<16x128xbf16>
    %18 = vector.extract_strided_slice %0 {offsets = [0, 2], sizes = [16, 1], strides = [1, 1]} : vector<16x12xi32> to vector<16x1xi32>
    %19 = vector.broadcast %18 : vector<16x1xi32> to vector<16x128xi32>
    %20 = vector.broadcast %3 : vector<1x128xi32> to vector<16x128xi32>
    %21 = arith.cmpi eq, %19, %20 : vector<16x128xi32>
    %22 = arith.extui %21 : vector<16x128xi1> to vector<16x128xi32>
    %23 = arith.sitofp %22 : vector<16x128xi32> to vector<16x128xf32>
    %24 = arith.truncf %23 : vector<16x128xf32> to vector<16x128xbf16>
    %25 = vector.extract_strided_slice %0 {offsets = [0, 3], sizes = [16, 1], strides = [1, 1]} : vector<16x12xi32> to vector<16x1xi32>
    %26 = vector.broadcast %25 : vector<16x1xi32> to vector<16x128xi32>
    %27 = vector.broadcast %3 : vector<1x128xi32> to vector<16x128xi32>
    %28 = arith.cmpi eq, %26, %27 : vector<16x128xi32>
    %29 = arith.extui %28 : vector<16x128xi1> to vector<16x128xi32>
    %30 = arith.sitofp %29 : vector<16x128xi32> to vector<16x128xf32>
    %31 = arith.truncf %30 : vector<16x128xf32> to vector<16x128xbf16>
    %32 = vector.extract_strided_slice %0 {offsets = [0, 4], sizes = [16, 1], strides = [1, 1]} : vector<16x12xi32> to vector<16x1xi32>
    %33 = vector.broadcast %32 : vector<16x1xi32> to vector<16x128xi32>
    %34 = vector.broadcast %3 : vector<1x128xi32> to vector<16x128xi32>
    %35 = arith.cmpi eq, %33, %34 : vector<16x128xi32>
    %36 = arith.extui %35 : vector<16x128xi1> to vector<16x128xi32>
    %37 = arith.sitofp %36 : vector<16x128xi32> to vector<16x128xf32>
    %38 = arith.truncf %37 : vector<16x128xf32> to vector<16x128xbf16>
    %39 = vector.extract_strided_slice %0 {offsets = [0, 5], sizes = [16, 1], strides = [1, 1]} : vector<16x12xi32> to vector<16x1xi32>
    %40 = vector.broadcast %39 : vector<16x1xi32> to vector<16x128xi32>
    %41 = vector.broadcast %3 : vector<1x128xi32> to vector<16x128xi32>
    %42 = arith.cmpi eq, %40, %41 : vector<16x128xi32>
    %43 = arith.extui %42 : vector<16x128xi1> to vector<16x128xi32>
    %44 = arith.sitofp %43 : vector<16x128xi32> to vector<16x128xf32>
    %45 = arith.truncf %44 : vector<16x128xf32> to vector<16x128xbf16>
    %46 = vector.extract_strided_slice %0 {offsets = [0, 6], sizes = [16, 1], strides = [1, 1]} : vector<16x12xi32> to vector<16x1xi32>
    %47 = vector.broadcast %46 : vector<16x1xi32> to vector<16x128xi32>
    %48 = vector.broadcast %3 : vector<1x128xi32> to vector<16x128xi32>
    %49 = arith.cmpi eq, %47, %48 : vector<16x128xi32>
    %50 = arith.extui %49 : vector<16x128xi1> to vector<16x128xi32>
    %51 = arith.sitofp %50 : vector<16x128xi32> to vector<16x128xf32>
    %52 = arith.truncf %51 : vector<16x128xf32> to vector<16x128xbf16>
    %53 = vector.extract_strided_slice %0 {offsets = [0, 7], sizes = [16, 1], strides = [1, 1]} : vector<16x12xi32> to vector<16x1xi32>
    %54 = vector.broadcast %53 : vector<16x1xi32> to vector<16x128xi32>
    %55 = vector.broadcast %3 : vector<1x128xi32> to vector<16x128xi32>
    %56 = arith.cmpi eq, %54, %55 : vector<16x128xi32>
    %57 = arith.extui %56 : vector<16x128xi1> to vector<16x128xi32>
    %58 = arith.sitofp %57 : vector<16x128xi32> to vector<16x128xf32>
    %59 = arith.truncf %58 : vector<16x128xf32> to vector<16x128xbf16>
    %60 = vector.extract_strided_slice %0 {offsets = [0, 8], sizes = [16, 1], strides = [1, 1]} : vector<16x12xi32> to vector<16x1xi32>
    %61 = vector.broadcast %60 : vector<16x1xi32> to vector<16x128xi32>
    %62 = vector.broadcast %3 : vector<1x128xi32> to vector<16x128xi32>
    %63 = arith.cmpi eq, %61, %62 : vector<16x128xi32>
    %64 = arith.extui %63 : vector<16x128xi1> to vector<16x128xi32>
    %65 = arith.sitofp %64 : vector<16x128xi32> to vector<16x128xf32>
    %66 = arith.truncf %65 : vector<16x128xf32> to vector<16x128xbf16>
    %67 = vector.extract_strided_slice %0 {offsets = [0, 9], sizes = [16, 1], strides = [1, 1]} : vector<16x12xi32> to vector<16x1xi32>
    %68 = vector.broadcast %67 : vector<16x1xi32> to vector<16x128xi32>
    %69 = vector.broadcast %3 : vector<1x128xi32> to vector<16x128xi32>
    %70 = arith.cmpi eq, %68, %69 : vector<16x128xi32>
    %71 = arith.extui %70 : vector<16x128xi1> to vector<16x128xi32>
    %72 = arith.sitofp %71 : vector<16x128xi32> to vector<16x128xf32>
    %73 = arith.truncf %72 : vector<16x128xf32> to vector<16x128xbf16>
    %74 = vector.extract_strided_slice %0 {offsets = [0, 10], sizes = [16, 1], strides = [1, 1]} : vector<16x12xi32> to vector<16x1xi32>
    %75 = vector.broadcast %74 : vector<16x1xi32> to vector<16x128xi32>
    %76 = vector.broadcast %3 : vector<1x128xi32> to vector<16x128xi32>
    %77 = arith.cmpi eq, %75, %76 : vector<16x128xi32>
    %78 = arith.extui %77 : vector<16x128xi1> to vector<16x128xi32>
    %79 = arith.sitofp %78 : vector<16x128xi32> to vector<16x128xf32>
    %80 = arith.truncf %79 : vector<16x128xf32> to vector<16x128xbf16>
    %81 = vector.extract_strided_slice %0 {offsets = [0, 11], sizes = [16, 1], strides = [1, 1]} : vector<16x12xi32> to vector<16x1xi32>
    %82 = vector.broadcast %81 : vector<16x1xi32> to vector<16x128xi32>
    %83 = vector.broadcast %3 : vector<1x128xi32> to vector<16x128xi32>
    %84 = arith.cmpi eq, %82, %83 : vector<16x128xi32>
    %85 = arith.extui %84 : vector<16x128xi1> to vector<16x128xi32>
    %86 = arith.sitofp %85 : vector<16x128xi32> to vector<16x128xf32>
    %87 = arith.truncf %86 : vector<16x128xf32> to vector<16x128xbf16>
    %88 = tpu.concatenate %10, %17, %24, %31, %38, %45, %52, %59, %66, %73, %80, %87 in 0 : vector<16x128xbf16>, vector<16x128xbf16>, vector<16x128xbf16>, vector<16x128xbf16>, vector<16x128xbf16>, vector<16x128xbf16>, vector<16x128xbf16>, vector<16x128xbf16>, vector<16x128xbf16>, vector<16x128xbf16>, vector<16x128xbf16>, vector<16x128xbf16> -> vector<192x128xbf16>
    %cst = arith.constant dense<0.000000e+00> : vector<192x128xf32>
    %89 = tpu.matmul %88, %1, %cst {dimension_numbers = #tpu.dot_dimension_numbers<[1], [0], [0], [1], [0, 0, 1, 1], [], []>} : vector<192x128xbf16>, vector<128x128xbf16>, vector<192x128xf32> -> vector<192x128xf32>
    %90 = vector.extract_strided_slice %89 {offsets = [0, 0], sizes = [16, 128], strides = [1, 1]} : vector<192x128xf32> to vector<16x128xf32>
    %91 = vector.extract_strided_slice %89 {offsets = [16, 0], sizes = [16, 128], strides = [1, 1]} : vector<192x128xf32> to vector<16x128xf32>
    %92 = vector.extract_strided_slice %89 {offsets = [32, 0], sizes = [16, 128], strides = [1, 1]} : vector<192x128xf32> to vector<16x128xf32>
    %93 = vector.extract_strided_slice %89 {offsets = [48, 0], sizes = [16, 128], strides = [1, 1]} : vector<192x128xf32> to vector<16x128xf32>
    %94 = vector.extract_strided_slice %89 {offsets = [64, 0], sizes = [16, 128], strides = [1, 1]} : vector<192x128xf32> to vector<16x128xf32>
    %95 = vector.extract_strided_slice %89 {offsets = [80, 0], sizes = [16, 128], strides = [1, 1]} : vector<192x128xf32> to vector<16x128xf32>
    %96 = vector.extract_strided_slice %89 {offsets = [96, 0], sizes = [16, 128], strides = [1, 1]} : vector<192x128xf32> to vector<16x128xf32>
    %97 = vector.extract_strided_slice %89 {offsets = [112, 0], sizes = [16, 128], strides = [1, 1]} : vector<192x128xf32> to vector<16x128xf32>
    %98 = vector.extract_strided_slice %89 {offsets = [128, 0], sizes = [16, 128], strides = [1, 1]} : vector<192x128xf32> to vector<16x128xf32>
    %99 = vector.extract_strided_slice %89 {offsets = [144, 0], sizes = [16, 128], strides = [1, 1]} : vector<192x128xf32> to vector<16x128xf32>
    %100 = vector.extract_strided_slice %89 {offsets = [160, 0], sizes = [16, 128], strides = [1, 1]} : vector<192x128xf32> to vector<16x128xf32>
    %101 = vector.extract_strided_slice %89 {offsets = [176, 0], sizes = [16, 128], strides = [1, 1]} : vector<192x128xf32> to vector<16x128xf32>
    %102 = arith.maximumf %90, %91 : vector<16x128xf32>
    %103 = arith.maximumf %92, %93 : vector<16x128xf32>
    %104 = arith.maximumf %94, %95 : vector<16x128xf32>
    %105 = arith.maximumf %96, %97 : vector<16x128xf32>
    %106 = arith.maximumf %98, %99 : vector<16x128xf32>
    %107 = arith.maximumf %100, %101 : vector<16x128xf32>
    %108 = arith.maximumf %102, %103 : vector<16x128xf32>
    %109 = arith.maximumf %104, %105 : vector<16x128xf32>
    %110 = arith.maximumf %106, %107 : vector<16x128xf32>
    %111 = arith.maximumf %108, %109 : vector<16x128xf32>
    %112 = arith.maximumf %111, %110 : vector<16x128xf32>
    %113 = arith.truncf %112 : vector<16x128xf32> to vector<16x128xbf16>
    %cst_5 = arith.constant dense<0.000000e+00> : vector<16x128xf32>
    %114 = tpu.matmul %113, %2, %cst_5 {dimension_numbers = #tpu.dot_dimension_numbers<[1], [0], [0], [1], [0, 0, 1, 1], [], []>} : vector<16x128xbf16>, vector<128x128xbf16>, vector<16x128xf32> -> vector<16x128xf32>
    %c0_6 = arith.constant 0 : index
    %c0_7 = arith.constant 0 : index
    %115 = vector.load %arg4[%c0_6, %c0_7] : memref<16x128xf32, #tpu.memory_space<vmem>>, vector<16x128xf32>
    tpu.vector_store %arg4[%c0_6, %c0_7], %114 {strides = array<i32>} : memref<16x128xf32, #tpu.memory_space<vmem>>, vector<16x128xf32>,
    return
  }
  func.func @transform_0(%arg0: i32) -> (i32, i32) {
    %c0_i32 = arith.constant 0 : i32
    %c0_i32_0 = arith.constant 0 : i32
    return %arg0, %c0_i32 : i32, i32
  }
  func.func @transform_1(%arg0: i32) -> (i32, i32) {
    %c0_i32 = arith.constant 0 : i32
    %c0_i32_0 = arith.constant 0 : i32
    %c0_i32_1 = arith.constant 0 : i32
    return %c0_i32, %c0_i32_0 : i32, i32
  }
  func.func @transform_2(%arg0: i32) -> (i32, i32) {
    %c0_i32 = arith.constant 0 : i32
    %c0_i32_0 = arith.constant 0 : i32
    %c0_i32_1 = arith.constant 0 : i32
    return %c0_i32, %c0_i32_0 : i32, i32
  }
  func.func @transform_3(%arg0: i32) -> (i32, i32) {
    %c0_i32 = arith.constant 0 : i32
    %c0_i32_0 = arith.constant 0 : i32
    return %arg0, %c0_i32 : i32, i32
  }
}

</mosaic_0001>

<bundles_post_ra>
// kernel: tpu_custom_call.1
= control target key start
LH: loop header
LB: loop body
LE: loop exit
PB: predicated region body
PF: predicated region fallthrough
CT: control target
= control target key end

     0   :  { %8 = vsyncpa [#allocation3], 0  ;;  %s1020_s0 = inlined_call_operand.hbm [shape: s32[16,12], index: 0, kind: input, shape index: {}]   ;;  %s1021_s1 = inlined_call_operand.hbm [shape: bf16[128,128], index: 1, kind: input, shape index: {}]   ;;  %s1022_s2 = inlined_call_operand.hbm [shape: bf16[128,128], index: 2, kind: input, shape index: {}]   ;;  %s1023_s3 = inlined_call_operand.hbm [shape: f32[16,128], index: 3, kind: output, shape index: {}]  }
   0x1   :  { %9 = vsyncpa [#allocation6], 0 }
   0x2   :  { %10 = vsyncpa [#allocation4], 0  ;;  %s863_s12 = smov [#allocation5]   ;;  %s769_s16 = scalar_lea.hbm %s1021_s1, 1024 }
   0x3   :  { %s28_s13 = sshll.u32 %s863_s12, 4  ;;  %p770_p0 = scmp.ne.s32.totalorder %s1021_s1, %s769_s16  ;;  %s29_s13 = int_to_ptr.vmem [resolvable:$true] %s28_s13 }
   0x4   :  { %p773_p1 = scmp.lt.u32.totalorder %s769_s16, %s1021_s1 }
   0x6   :  { %p775_p2 = pnand %p773_p1, %p770_p0 }
   0x8   :  { %778 = shalt.err (!%p775_p2)
}
   0x9   :  { %s779_s21 = scalar_lea.vmem %s29_s13, 1024  ;;  %p784_p4 = scmp.lt.s32.totalorder %s29_s13, %s29_s13 }
   0xa   :  { %p780_p3 = scmp.ne.s32.totalorder %s29_s13, %s779_s21  ;;  %p785_p5 = scmp.lt.s32.totalorder %s779_s21, %s779_s21 }
   0xc   :  { %p786_p6 = por %p785_p5, %p784_p4 }
   0xe   :  { %p787_p7 = pnand %p786_p6, %p780_p3 }
  0x10   :  { %790 = shalt.err (!%p787_p7)
}
  0x11   :  { %s864_s22 = smov 64   ;;  %s865_s23 = smov 4  }
  0x12   :  { %34 = dma.hbm_to_vmem [thread:$0]  %s1021_s1, 1024, %s29_s13, [#allocation6], %s864_s22, %s864_s22, %s865_s23  }
  0x13   :  { %s866_s26 = smov [#allocation2]   ;;  %s791_s30 = scalar_lea.hbm %s1020_s0, 256 }
  0x14   :  { %s16_s27 = sshll.u32 %s866_s26, 4  ;;  %p792_p8 = scmp.ne.s32.totalorder %s1020_s0, %s791_s30  ;;  %s17_s27 = int_to_ptr.vmem [resolvable:$true] %s16_s27 }
  0x15   :  { %p795_p9 = scmp.lt.u32.totalorder %s791_s30, %s1020_s0 }
  0x17   :  { %p797_p10 = pnand %p795_p9, %p792_p8 }
  0x19   :  { %800 = shalt.err (!%p797_p10)
}
  0x1a   :  { %s801_s8 = scalar_lea.vmem %s17_s27, 256  ;;  %p806_p12 = scmp.lt.s32.totalorder %s17_s27, %s17_s27 }
  0x1b   :  { %p802_p11 = scmp.ne.s32.totalorder %s17_s27, %s801_s8  ;;  %p807_p13 = scmp.lt.s32.totalorder %s801_s8, %s801_s8 }
  0x1d   :  { %p808_p0 = por %p807_p13, %p806_p12 }
  0x1f   :  { %p809_p1 = pnand %p808_p0, %p802_p11 }
  0x21   :  { %812 = shalt.err (!%p809_p1)
}
  0x22   :  { %s867_s1 = smov 128   ;;  %s868_s9 = smov 8  }
  0x23   :  { %22 = dma.hbm_to_vmem [thread:$0]  %s1020_s0, 256, %s17_s27, [#allocation3], %s867_s1, %s867_s1, %s868_s9  }
  0x24   :  { %s869_s12 = smov [#allocation7]   ;;  %s813_s16 = scalar_lea.hbm %s1022_s2, 1024 }
  0x25   :  { %s40_s13 = sshll.u32 %s869_s12, 4  ;;  %p814_p2 = scmp.ne.s32.totalorder %s1022_s2, %s813_s16  ;;  %s41_s13 = int_to_ptr.vmem [resolvable:$true] %s40_s13 }
  0x26   :  { %p817_p3 = scmp.lt.u32.totalorder %s813_s16, %s1022_s2 }
  0x28   :  { %p819_p4 = pnand %p817_p3, %p814_p2 }
  0x2a   :  { %822 = shalt.err (!%p819_p4)
}
  0x2b   :  { %s823_s21 = scalar_lea.vmem %s41_s13, 1024  ;;  %p828_p6 = scmp.lt.s32.totalorder %s41_s13, %s41_s13 }
  0x2c   :  { %p824_p5 = scmp.ne.s32.totalorder %s41_s13, %s823_s21  ;;  %p829_p7 = scmp.lt.s32.totalorder %s823_s21, %s823_s21 }
  0x2e   :  { %p830_p8 = por %p829_p7, %p828_p6 }
  0x30   :  { %p831_p9 = pnand %p830_p8, %p824_p5 }
  0x32   :  { %834 = shalt.err (!%p831_p9)
}
  0x33   :  { %46 = dma.hbm_to_vmem [thread:$0]  %s1022_s2, 1024, %s41_s13, [#allocation6], %s864_s22, %s864_s22, %s865_s23  }
  0x34   :  { %857 = dma.done.wait [#allocation3], 256  }
  0x35   :  { %858 = vsyncadd [#allocation3], 4294967040 }
  0x36   :  { %859 = dma.done.wait [#allocation6], 2048  }
  0x37   :  { %860 = vsyncadd [#allocation6], 4294965248  ;;  %v870_v0 = vmov 1   ;;  %v871_v1 = vmov 0   ;;  %v951_v2 = vld [vmem:[#allocation2] sm:$0xff]  ;;  %v953_v3 = vld [vmem:[#allocation2 + $0x8] sm:$0xff]  ;;  %v91_v22 = vlaneseq }
  0x38   :  { %735 = vset.pattern.permute.xlu1 %v870_v0  ;;  %734 = vset.pattern.permute.xlu0 %v871_v1  ;;  %v753_v4 = vld [vmem:[#allocation5] sm:$0xff]   ;;  %v754_v5 = vld [vmem:[#allocation5 + $0x8] sm:$0xff]   ;;  %v755_v6 = vld [vmem:[#allocation5 + $0x10] sm:$0xff]   ;;  %v872_v8 = vmov 2   ;;  %v873_v10 = vmov 3   ;;  %v874_v12 = vmov 4  }
  0x39   :  { %107 = vperm.xlu1 %735, %v951_v2   ;;  %94 = vperm.xlu0 %734, %v951_v2   ;;  %v756_v7 = vld [vmem:[#allocation5 + $0x18] sm:$0xff]   ;;  %v757_v9 = vld [vmem:[#allocation5 + $0x20] sm:$0xff]   ;;  %v758_v11 = vld [vmem:[#allocation5 + $0x28] sm:$0xff]   ;;  %v875_v13 = vmov 5   ;;  %v876_v15 = vmov 6   ;;  %v877_v17 = vmov 8  }
  0x3a   :  { %651 = vmatprep.subr.bf16.mxu0 %v753_v4  ;;  %v759_v14 = vld [vmem:[#allocation5 + $0x30] sm:$0xff]   ;;  %v760_v16 = vld [vmem:[#allocation5 + $0x38] sm:$0xff]   ;;  %v878_v18 = vmov 9   ;;  %v879_v19 = vmov 7   ;;  %v880_v20 = vmov 11   ;;  %v881_v21 = vmov 10  }
  0x3b   :  { %652 = vmatpush3.bf16.msra.mxu0 %v753_v4  ;;  %v979_v25 = vand.u32 127, %v91_v22  ;;  %v882_v28 = vmov 1.0|1.0   ;;  %v761_v49 = vld [vmem:[#allocation7] sm:$0xff]   ;;  %v883_v50 = vmov 0.0   ;;  %v762_v51 = vld [vmem:[#allocation7 + $0x8] sm:$0xff]  }
  0x3c   :  { %653 = vmatprep.subr.bf16.mxu0 %v754_v5  ;;  %691 = vmatprep.subr.bf16.mxu1 %v883_v50  ;;  %v763_v52 = vld [vmem:[#allocation7 + $0x10] sm:$0xff]   ;;  %v764_v53 = vld [vmem:[#allocation7 + $0x18] sm:$0xff]   ;;  %v765_v54 = vld [vmem:[#allocation7 + $0x20] sm:$0xff]   ;;  %s885_s2 = smov [#allocation8]  }
  0x3d   :  { %110 = vperm.xlu1 %735, %v953_v3   ;;  %97 = vperm.xlu0 %734, %v953_v3   ;;  %v766_v55 = vld [vmem:[#allocation7 + $0x28] sm:$0xff]   ;;  %v767_v56 = vld [vmem:[#allocation7 + $0x30] sm:$0xff]   ;;  %v768_v57 = vld [vmem:[#allocation7 + $0x38] sm:$0xff]   ;;  %s545_s22 = sshll.u32 %s885_s2, 4  ;;  %s546_s22 = int_to_ptr.vmem [resolvable:$true] %s545_s22 }
  0x3e   :  { %692 = vmatpush3.bf16.msra.mxu1 %v761_v49  ;;  %s835_s23 = scalar_lea.vmem %s546_s22, 256  ;;  %p840_p11 = scmp.lt.s32.totalorder %s546_s22, %s546_s22 }
  0x3f   :  { %654 = vmatpush3.bf16.msra.mxu0 %v754_v5  ;;  %693 = vmatprep.subr.bf16.mxu1 %v883_v50  ;;  %p836_p10 = scmp.ne.s32.totalorder %s546_s22, %s835_s23  ;;  %p841_p12 = scmp.lt.s32.totalorder %s835_s23, %s835_s23 }
  0x40   :  { %655 = vmatprep.subr.bf16.mxu0 %v755_v6 }
  0x41   :  { %737 = vset.pattern.permute.xlu1 %v872_v8  ;;  %736 = vset.pattern.permute.xlu0 %v872_v8  ;;  %p842_p13 = por %p841_p12, %p840_p11 }
  0x42   :  { %123 = vperm.xlu1 %737, %v953_v3   ;;  %120 = vperm.xlu0 %736, %v951_v2  }
  0x43   :  { %656 = vmatpush3.bf16.msra.mxu0 %v755_v6  ;;  %694 = vmatpush3.bf16.msra.mxu1 %v762_v51  ;;  %p843_p0 = pnand %p842_p13, %p836_p10 }
  0x44   :  { %657 = vmatprep.subr.bf16.mxu0 %v756_v7  ;;  %695 = vmatprep.subr.bf16.mxu1 %v883_v50 }
  0x46   :  { %738 = vset.pattern.permute.xlu1 %v873_v10  ;;  %739 = vset.pattern.permute.xlu0 %v873_v10 }
  0x47   :  { %133 = vperm.xlu1 %738, %v951_v2   ;;  %136 = vperm.xlu0 %739, %v953_v3  }
  0x48   :  { %658 = vmatpush3.bf16.msra.mxu0 %v756_v7  ;;  %696 = vmatpush3.bf16.msra.mxu1 %v763_v52 }
  0x49   :  { %659 = vmatprep.subr.bf16.mxu0 %v757_v9  ;;  %697 = vmatprep.subr.bf16.mxu1 %v883_v50 }
  0x4b   :  { %740 = vset.pattern.permute.xlu1 %v874_v12  ;;  %741 = vset.pattern.permute.xlu0 %v875_v13 }
  0x4c   :  { %146 = vperm.xlu1 %740, %v951_v2   ;;  %159 = vperm.xlu0 %741, %v951_v2  }
  0x4d   :  { %660 = vmatpush3.bf16.msra.mxu0 %v757_v9  ;;  %698 = vmatpush3.bf16.msra.mxu1 %v764_v53 }
  0x4e   :  { %661 = vmatprep.subr.bf16.mxu0 %v758_v11  ;;  %699 = vmatprep.subr.bf16.mxu1 %v883_v50 }
  0x50   :  { %149 = vperm.xlu1 %740, %v953_v3   ;;  %744 = vset.pattern.permute.xlu0 %v876_v15 }
  0x51   :  { %175 = vperm.xlu0 %744, %v953_v3   ;;  %662 = vmatpush3.bf16.msra.mxu0 %v758_v11 }
  0x52   :  { %663 = vmatprep.subr.bf16.mxu0 %v759_v14  ;;  %700 = vmatpush3.bf16.msra.mxu1 %v765_v54 }
  0x53   :  { %701 = vmatprep.subr.bf16.mxu1 %v883_v50 }
  0x54   :  { %742 = vset.pattern.permute.xlu1 %v875_v13 }
  0x55   :  { %162 = vperm.xlu1 %742, %v953_v3   ;;  %746 = vset.pattern.permute.xlu0 %v877_v17 }
  0x56   :  { %198 = vperm.xlu0 %746, %v951_v2   ;;  %664 = vmatpush3.bf16.msra.mxu0 %v759_v14 }
  0x57   :  { %665 = vmatprep.subr.bf16.mxu0 %v760_v16  ;;  %702 = vmatpush3.bf16.msra.mxu1 %v766_v55 }
  0x58   :  { %703 = vmatprep.subr.bf16.mxu1 %v883_v50 }
  0x59   :  { %743 = vset.pattern.permute.xlu1 %v876_v15 }
  0x5a   :  { %172 = vperm.xlu1 %743, %v951_v2   ;;  %749 = vset.pattern.permute.xlu0 %v878_v18 }
  0x5b   :  { %214 = vperm.xlu0 %749, %v953_v3   ;;  %666 = vmatpush3.bf16.msra.mxu0 %v760_v16 }
  0x5c   :  { %704 = vmatpush3.bf16.msra.mxu1 %v767_v56 }
  0x5d   :  { %705 = vmatprep.subr.bf16.mxu1 %v883_v50 }
  0x5e   :  { %745 = vset.pattern.permute.xlu1 %v879_v19 }
  0x5f   :  { %185 = vperm.xlu1 %745, %v951_v2   ;;  %751 = vset.pattern.permute.xlu0 %v880_v20 }
  0x60   :  { %237 = vperm.xlu0 %751, %v951_v2   ;;  %706 = vmatpush3.bf16.msra.mxu1 %v768_v57 }
  0x63   :  { %188 = vperm.xlu1 %745, %v953_v3  }
  0x67   :  { %747 = vset.pattern.permute.xlu1 %v877_v17 }
  0x68   :  { %201 = vperm.xlu1 %747, %v953_v3  }
  0x6c   :  { %748 = vset.pattern.permute.xlu1 %v878_v18 }
  0x6d   :  { %211 = vperm.xlu1 %748, %v951_v2  }
  0x71   :  { %750 = vset.pattern.permute.xlu1 %v881_v21 }
  0x72   :  { %224 = vperm.xlu1 %750, %v951_v2  }
  0x76   :  { %227 = vperm.xlu1 %750, %v953_v3  }
  0x7a   :  { %752 = vset.pattern.permute.xlu1 %v880_v20 }
  0x7b   :  { %240 = vperm.xlu1 %752, %v953_v3  }
  0xb8   :  { %v108_v23 = vpop.permute.xlu1 %107  ;;  %v95_v24 = vpop.permute.xlu0 %94 }
  0xb9   :  { %vm99_vm0 = vcmp.eq.s32.totalorder %v95_v24, %v979_v25  ;;  %vm112_vm1 = vcmp.eq.s32.totalorder %v108_v23, %v979_v25 }
  0xbc   :  { %v111_v26 = vpop.permute.xlu1 %110  ;;  %v98_v27 = vpop.permute.xlu0 %97 }
  0xbd   :  { %vm113_vm2 = vcmp.eq.s32.totalorder %v111_v26, %v979_v25  ;;  %vm100_vm3 = vcmp.eq.s32.totalorder %v98_v27, %v979_v25 }
  0xbe   :  { %vm592_vm4 = vmpackc.low %vm113_vm2, %vm112_vm1 }
  0xbf   :  { %vm590_vm5 = vmpackc.low %vm100_vm3, %vm99_vm0 }
  0xc0   :  { %667 = vmatprep.mubr.msk.bf16.mxu0 %vm590_vm5, %v882_v28 }
  0xc1   :  { %668 = vmatmul.mubr.msk.bf16.vlgmr.msra.gmra.mrb[0].mxu0 %vm592_vm4, %v882_v28  ;;  %v124_v29 = vpop.permute.xlu1 %123  ;;  %v121_v30 = vpop.permute.xlu0 %120 }
  0xc2   :  { %vm126_vm6 = vcmp.eq.s32.totalorder %v124_v29, %v979_v25  ;;  %vm125_vm7 = vcmp.eq.s32.totalorder %v121_v30, %v979_v25 }
  0xc3   :  { %vm594_vm8 = vmpackc.low %vm126_vm6, %vm125_vm7 }
  0xc4   :  { %671 = vmatprep.mubr.msk.bf16.mxu0 %vm594_vm8, %v882_v28 }
  0xc6   :  { %v134_v31 = vpop.permute.xlu1 %133  ;;  %v137_v32 = vpop.permute.xlu0 %136 }
  0xc7   :  { %vm138_vm9 = vcmp.eq.s32.totalorder %v134_v31, %v979_v25  ;;  %vm139_vm10 = vcmp.eq.s32.totalorder %v137_v32, %v979_v25 }
  0xc8   :  { %vm596_vm11 = vmpackc.low %vm139_vm10, %vm138_vm9 }
  0xc9   :  { %672 = vmatmul.mubr.msk.bf16.gmra.mrb[4].mxu0 %vm596_vm11, %v882_v28 }
  0xcb   :  { %v147_v33 = vpop.permute.xlu1 %146  ;;  %v160_v35 = vpop.permute.xlu0 %159 }
  0xcc   :  { %vm151_vm12 = vcmp.eq.s32.totalorder %v147_v33, %v979_v25  ;;  %vm164_vm15 = vcmp.eq.s32.totalorder %v160_v35, %v979_v25 }
  0xcf   :  { %v150_v34 = vpop.permute.xlu1 %149 }
  0xd0   :  { %vm152_vm13 = vcmp.eq.s32.totalorder %v150_v34, %v979_v25  ;;  %v176_v37 = vpop.permute.xlu0 %175 }
  0xd1   :  { %vm598_vm14 = vmpackc.low %vm152_vm13, %vm151_vm12  ;;  %vm178_vm2 = vcmp.eq.s32.totalorder %v176_v37, %v979_v25 }
  0xd2   :  { %675 = vmatprep.mubr.msk.bf16.mxu0 %vm598_vm14, %v882_v28 }
  0xd4   :  { %v163_v36 = vpop.permute.xlu1 %162 }
  0xd5   :  { %vm165_vm0 = vcmp.eq.s32.totalorder %v163_v36, %v979_v25  ;;  %v199_v41 = vpop.permute.xlu0 %198 }
  0xd6   :  { %vm600_vm1 = vmpackc.low %vm165_vm0, %vm164_vm15  ;;  %vm203_vm8 = vcmp.eq.s32.totalorder %v199_v41, %v979_v25 }
  0xd7   :  { %676 = vmatmul.mubr.msk.bf16.gmra.mrb[8].mxu0 %vm600_vm1, %v882_v28 }
  0xd9   :  { %v173_v38 = vpop.permute.xlu1 %172 }
  0xda   :  { %vm177_vm3 = vcmp.eq.s32.totalorder %v173_v38, %v979_v25  ;;  %v215_v43 = vpop.permute.xlu0 %214 }
  0xdb   :  { %vm602_vm4 = vmpackc.low %vm178_vm2, %vm177_vm3  ;;  %vm217_vm11 = vcmp.eq.s32.totalorder %v215_v43, %v979_v25 }
  0xdc   :  { %679 = vmatprep.mubr.msk.bf16.mxu0 %vm602_vm4, %v882_v28  ;;  %vm884_vm4 = vmmov 0  }
  0xdd   :  { %707 = vmatprep.mubr.msk.bf16.mxu1 %vm884_vm4, %v883_v50 }
  0xde   :  { %v186_v39 = vpop.permute.xlu1 %185 }
  0xdf   :  { %vm190_vm5 = vcmp.eq.s32.totalorder %v186_v39, %v979_v25  ;;  %v238_v47 = vpop.permute.xlu0 %237 }
  0xe0   :  { %vm242_vm1 = vcmp.eq.s32.totalorder %v238_v47, %v979_v25 }
  0xe2   :  { %v189_v40 = vpop.permute.xlu1 %188 }
  0xe3   :  { %vm191_vm6 = vcmp.eq.s32.totalorder %v189_v40, %v979_v25 }
  0xe4   :  { %vm604_vm7 = vmpackc.low %vm191_vm6, %vm190_vm5 }
  0xe5   :  { %680 = vmatmul.mubr.msk.bf16.gmra.mrb[12].mxu0 %vm604_vm7, %v882_v28 }
  0xe7   :  { %v202_v42 = vpop.permute.xlu1 %201 }
  0xe8   :  { %vm204_vm9 = vcmp.eq.s32.totalorder %v202_v42, %v979_v25 }
  0xe9   :  { %vm606_vm10 = vmpackc.low %vm204_vm9, %vm203_vm8 }
  0xea   :  { %683 = vmatprep.mubr.msk.bf16.mxu0 %vm606_vm10, %v882_v28 }
  0xec   :  { %v212_v44 = vpop.permute.xlu1 %211 }
  0xed   :  { %vm216_vm12 = vcmp.eq.s32.totalorder %v212_v44, %v979_v25 }
  0xee   :  { %vm608_vm13 = vmpackc.low %vm217_vm11, %vm216_vm12 }
  0xef   :  { %684 = vmatmul.mubr.msk.bf16.gmra.mrb[16].mxu0 %vm608_vm13, %v882_v28 }
  0xf1   :  { %v225_v45 = vpop.permute.xlu1 %224 }
  0xf2   :  { %vm229_vm14 = vcmp.eq.s32.totalorder %v225_v45, %v979_v25 }
  0xf5   :  { %v228_v46 = vpop.permute.xlu1 %227 }
  0xf6   :  { %vm230_vm15 = vcmp.eq.s32.totalorder %v228_v46, %v979_v25 }
  0xf7   :  { %vm610_vm0 = vmpackc.low %vm230_vm15, %vm229_vm14 }
  0xf8   :  { %687 = vmatprep.mubr.msk.bf16.mxu0 %vm610_vm0, %v882_v28 }
  0xfa   :  { %v241_v48 = vpop.permute.xlu1 %240 }
  0xfb   :  { %vm243_vm2 = vcmp.eq.s32.totalorder %v241_v48, %v979_v25 }
  0xfc   :  { %vm612_vm3 = vmpackc.low %vm243_vm2, %vm242_vm1 }
  0xfd   :  { %688 = vmatmul.mubr.msk.bf16.gmra.mrb[20].mxu0 %vm612_vm3, %v882_v28 }
 0x194   :  { %v669_v58 = vpop.f32.mrb[0].mxu0 }
 0x195   :  { %v331_v59 = vpop.f32.mrb[1].mxu0 }
 0x196   :  { %v426_v60 = vmax.f32 %v331_v59, %v669_v58  ;;  %v670_v61 = vpop.f32.mrb[2].mxu0 }
 0x197   :  { %v334_v62 = vpop.f32.mrb[3].mxu0 }
 0x198   :  { %v427_v63 = vmax.f32 %v334_v62, %v670_v61 }
 0x19c   :  { %v673_v0 = vpop.f32.mrb[4].mxu0 }
 0x19d   :  { %v347_v1 = vpop.f32.mrb[5].mxu0 }
 0x19e   :  { %v428_v2 = vmax.f32 %v347_v1, %v673_v0  ;;  %v674_v3 = vpop.f32.mrb[6].mxu0 }
 0x19f   :  { %v350_v4 = vpop.f32.mrb[7].mxu0 }
 0x1a0   :  { %v438_v5 = vmax.f32 %v426_v60, %v428_v2  ;;  %v429_v6 = vmax.f32 %v350_v4, %v674_v3 }
 0x1a2   :  { %v439_v7 = vmax.f32 %v427_v63, %v429_v6 }
 0x1aa   :  { %v677_v8 = vpop.f32.mrb[8].mxu0 }
 0x1ab   :  { %v363_v9 = vpop.f32.mrb[9].mxu0 }
 0x1ac   :  { %v430_v10 = vmax.f32 %v363_v9, %v677_v8  ;;  %v678_v11 = vpop.f32.mrb[10].mxu0 }
 0x1ad   :  { %v366_v12 = vpop.f32.mrb[11].mxu0 }
 0x1ae   :  { %v431_v13 = vmax.f32 %v366_v12, %v678_v11 }
 0x1b8   :  { %v681_v14 = vpop.f32.mrb[12].mxu0 }
 0x1b9   :  { %v379_v15 = vpop.f32.mrb[13].mxu0 }
 0x1ba   :  { %v432_v16 = vmax.f32 %v379_v15, %v681_v14  ;;  %v682_v17 = vpop.f32.mrb[14].mxu0 }
 0x1bb   :  { %v382_v18 = vpop.f32.mrb[15].mxu0 }
 0x1bc   :  { %v440_v19 = vmax.f32 %v430_v10, %v432_v16  ;;  %v433_v20 = vmax.f32 %v382_v18, %v682_v17 }
 0x1be   :  { %v444_v21 = vmax.f32 %v438_v5, %v440_v19  ;;  %v441_v22 = vmax.f32 %v431_v13, %v433_v20 }
 0x1c0   :  { %v445_v23 = vmax.f32 %v439_v7, %v441_v22 }
 0x1c2   :  { %v685_v24 = vpop.f32.mrb[16].mxu0 }
 0x1c3   :  { %v395_v25 = vpop.f32.mrb[17].mxu0 }
 0x1c4   :  { %v434_v26 = vmax.f32 %v395_v25, %v685_v24  ;;  %v686_v27 = vpop.f32.mrb[18].mxu0 }
 0x1c5   :  { %v398_v28 = vpop.f32.mrb[19].mxu0 }
 0x1c6   :  { %v435_v29 = vmax.f32 %v398_v28, %v686_v27 }
 0x1d0   :  { %v689_v30 = vpop.f32.mrb[20].mxu0 }
 0x1d1   :  { %v411_v31 = vpop.f32.mrb[21].mxu0 }
 0x1d2   :  { %v436_v32 = vmax.f32 %v411_v31, %v689_v30  ;;  %v690_v33 = vpop.f32.mrb[22].mxu0 }
 0x1d3   :  { %v414_v34 = vpop.f32.mrb[23].mxu0 }
 0x1d4   :  { %v442_v35 = vmax.f32 %v434_v26, %v436_v32  ;;  %v437_v36 = vmax.f32 %v414_v34, %v690_v33 }
 0x1d6   :  { %v446_v37 = vmax.f32 %v444_v21, %v442_v35  ;;  %v443_v38 = vmax.f32 %v435_v29, %v437_v36 }
 0x1d8   :  { %v447_v39 = vmax.f32 %v445_v23, %v443_v38 }
 0x1da   :  { %v448_v40 = vpack.c.bf16 %v447_v39, %v446_v37 }
 0x1dc   :  { %708 = vmatmul.mubr.bf16.vlgmr.msra.gmra.mrb[0].mxu1 %v448_v40 }
 0x2af   :  { %v531_v41 = vpop.f32.mrb[0].mxu1 }
 0x2b0   :  { %538 = vst [vmem:[#allocation8] sm:$0xff] %v531_v41  ;;  %v709_v42 = vpop.f32.mrb[1].mxu1 }
 0x2b1   :  { %v534_v43 = vpop.f32.mrb[2].mxu1 }
 0x2b2   :  { %539 = vst [vmem:[#allocation8 + $0x8] sm:$0xff] %v534_v43  ;;  %v710_v44 = vpop.f32.mrb[3].mxu1 }
 0x2b3   :  { %846 = shalt.err (!%p843_p0)
}
 0x2b4   :  { %s847_s27 = scalar_lea.hbm %s1023_s3, 256 }
 0x2b5   :  { %p848_p1 = scmp.ne.s32.totalorder %s1023_s3, %s847_s27  ;;  %p851_p2 = scmp.lt.u32.totalorder %s847_s27, %s1023_s3 }
 0x2b7   :  { %p853_p3 = pnand %p851_p2, %p848_p1 }
 0x2b9   :  { %856 = shalt.err (!%p853_p3)
}
 0x2ba   :  { %551 = dma.vmem_to_hbm [thread:$0]  %s546_s22, 256, %s1023_s3, [#allocation4], %s867_s1, %s867_s1, %s868_s9  }
 0x2bb   :  { %861 = dma.done.wait [#allocation4], 256  }
 0x2bc   :  { %862 = vsyncadd [#allocation4], 4294967040 }
 0x2bd   :  { %555 = vsyncpa [#allocation3], 1 }
 0x2be   :  { %556 = vsyncpa [#allocation6], 1 }
 0x2bf   :  { %557 = vsyncpa [#allocation4], 1 }

</bundles_post_ra>
